<compile_context>
chip_gen: v7x
topology: tpu7x:2x2x1
jax: 0.10.0
libtpu: 0.0.40
codegen_flags: <defaults>
</compile_context>

<pallas_src>
import jax
import jax.numpy as jnp
from jax.experimental import pallas as pl
from jax.experimental.pallas import tpu as pltpu

EPS = 1e-8


def _avg_kernel(x_ref, o_ref, acc_ref, cnt_ref):
    """One (batch-tile, seq-tile) step of the fused masked-average reduction.

    x_ref   : (TB, TS, E) VMEM  -- embedded tokens tile
    o_ref   : (TB, E)     VMEM  -- per-document averaged embedding (written once)
    acc_ref : (TB, E)     VMEM scratch, f32 -- running sum over S
    cnt_ref : (TB, 1)     VMEM scratch, f32 -- running count of non-zero tokens
    """
    s_idx = pl.program_id(1)

    @pl.when(s_idx == 0)
    def _():
        acc_ref[...] = jnp.zeros_like(acc_ref)
        cnt_ref[...] = jnp.zeros_like(cnt_ref)

    x = x_ref[...]  # (TB, TS, E) -- single HBM read per element, reused below

    # Token "non-zero" mask: sum_e |x| > eps   -> (TB, TS)
    abs_sum = jnp.sum(jnp.abs(x), axis=2)
    nonzero = (abs_sum > EPS).astype(jnp.float32)

    # Accumulate soft length and embedding sum.
    cnt_ref[...] += jnp.sum(nonzero, axis=1, keepdims=True)  # (TB, 1)
    acc_ref[...] += jnp.sum(x, axis=1)                       # (TB, E)

    @pl.when(s_idx == pl.num_programs(1) - 1)
    def _():
        soft_len = jnp.maximum(cnt_ref[...], 1.0)            # (TB, 1)
        o_ref[...] = (acc_ref[...] / soft_len).astype(o_ref.dtype)


def avg_forward(ebd, *, tb=None, ts=None):
    """Pallas implementation of AVG.forward.

    ebd     : (B, S, E) float32 -- already-embedded documents
    returns : (B, E)    float32 -- average of non-zero token embeddings
    """
    B, S, E = ebd.shape

    # Tile defaults: batch tile of up to 8 rows (sublane-aligned output block),
    # sequence tile of up to 128 tokens (pipelined reduction steps).
    if tb is None:
        tb = B if B < 8 else 8
    if ts is None:
        ts = S if S < 128 else 128

    # Pad so tiles divide evenly. Zero padding is semantically inert: padded
    # tokens have |x|-sum == 0 (don't affect soft_len or the sum); padded batch
    # rows are sliced off below. This also avoids garbage partial-block reads
    # polluting the accumulator.
    pb = (-B) % tb
    ps = (-S) % ts
    if pb or ps:
        ebd = jnp.pad(ebd, ((0, pb), (0, ps), (0, 0)))
    Bp, Sp = B + pb, S + ps

    grid = (Bp // tb, Sp // ts)  # (parallel batch tiles, sequence reduction)

    cost = pl.CostEstimate(
        flops=3 * Bp * Sp * E + Bp * E,
        transcendentals=0,
        bytes_accessed=(Bp * Sp * E + Bp * E) * 4,
    )

    out = pl.pallas_call(
        _avg_kernel,
        out_shape=jax.ShapeDtypeStruct((Bp, E), jnp.float32),
        grid_spec=pltpu.PrefetchScalarGridSpec(
            num_scalar_prefetch=0,
            grid=grid,
            in_specs=[
                pl.BlockSpec((tb, ts, E), lambda b, s: (b, s, 0)),
            ],
            out_specs=pl.BlockSpec((tb, E), lambda b, s: (b, 0)),
            scratch_shapes=[
                pltpu.VMEM((tb, E), jnp.float32),  # running embedding sum
                pltpu.VMEM((tb, 1), jnp.float32),  # running non-zero count
            ],
        ),
        compiler_params=pltpu.CompilerParams(
            dimension_semantics=("parallel", "arbitrary"),
        ),
        cost_estimate=cost,
    )(ebd)

    return out[:B]


def avg_forward_ref(ebd):
    """Pure-JAX reference mirroring the PyTorch AVG.forward semantics."""
    is_nonzero = (jnp.sum(jnp.abs(ebd), axis=2) > EPS).astype(jnp.float32)
    soft_len = jnp.sum(is_nonzero, axis=1, keepdims=True)
    soft_len = jnp.maximum(soft_len, 1.0)
    return jnp.sum(ebd, axis=1) / soft_len


if __name__ == "__main__":
    key = jax.random.PRNGKey(0)

    # Small shapes consistent with the module: batch=4, seq=32, ebd_dim=768.
    B, S, E = 4, 32, 768
    x = jax.random.normal(key, (B, S, E), jnp.float32)

    # Zero out trailing tokens with varying per-document lengths so soft_len
    # (the non-zero-token count) actually differs per batch element.
    lens = jnp.array([32, 20, 9, 1], dtype=jnp.int32)
    mask = (jnp.arange(S)[None, :] < lens[:, None]).astype(jnp.float32)
    x = x * mask[:, :, None]

    out = avg_forward(x)
    out = jax.block_until_ready(out)

    ref = avg_forward_ref(x)
    assert out.shape == (B, E), out.shape
    assert jnp.allclose(out, ref, atol=1e-5, rtol=1e-5), "mismatch vs reference"

    print("KERNEL_OK")
</pallas_src>

<mosaic_0001>
module attributes {stable_mosaic.version = 11 : i64} {
  func.func @_avg_kernel(%arg0: i32, %arg1: i32, %arg2: memref<4x32x768xf32, #tpu.memory_space<vmem>>, %arg3: memref<4x768xf32, #tpu.memory_space<vmem>>, %arg4: memref<4x768xf32, #tpu.memory_space<vmem>>, %arg5: memref<4x1xf32, #tpu.memory_space<vmem>>) attributes {dimension_semantics = [#tpu.dimension_semantics<parallel>, #tpu.dimension_semantics<arbitrary>], iteration_bounds = array<i64: 1, 1>, scalar_prefetch = 0 : i64, scratch_operands = 2 : i64, tpu.core_type = #tpu.core_type<tc>, window_params = [{transform_indices = @transform_0, window_bounds = array<i64: 4, 32, 768>}, {transform_indices = @transform_1, window_bounds = array<i64: 4, 768>}]} {
    %c0_i32 = arith.constant 0 : i32
    %0 = arith.cmpi eq, %arg1, %c0_i32 : i32
    %1 = arith.extui %0 : i1 to i32
    %c0_i32_0 = arith.constant 0 : i32
    %2 = arith.cmpi ne, %1, %c0_i32_0 : i32
    scf.if %2 {
      %cst_16 = arith.constant 0.000000e+00 : f32
      %22 = vector.broadcast %cst_16 : f32 to vector<4x768xf32>
      %c0_17 = arith.constant 0 : index
      %c0_18 = arith.constant 0 : index
      %23 = vector.load %arg4[%c0_17, %c0_18] : memref<4x768xf32, #tpu.memory_space<vmem>>, vector<4x768xf32>
      tpu.vector_store %arg4[%c0_17, %c0_18], %22 {strides = array<i32>} : memref<4x768xf32, #tpu.memory_space<vmem>>, vector<4x768xf32>,
      %cst_19 = arith.constant 0.000000e+00 : f32
      %24 = vector.broadcast %cst_19 : f32 to vector<4x1xf32>
      %c0_20 = arith.constant 0 : index
      %c0_21 = arith.constant 0 : index
      %25 = vector.load %arg5[%c0_20, %c0_21] : memref<4x1xf32, #tpu.memory_space<vmem>>, vector<4x1xf32>
      tpu.vector_store %arg5[%c0_20, %c0_21], %24 {strides = array<i32>} : memref<4x1xf32, #tpu.memory_space<vmem>>, vector<4x1xf32>,
    } else {
    }
    %c0 = arith.constant 0 : index
    %c0_1 = arith.constant 0 : index
    %c0_2 = arith.constant 0 : index
    %3 = vector.load %arg2[%c0, %c0_1, %c0_2] : memref<4x32x768xf32, #tpu.memory_space<vmem>>, vector<4x32x768xf32>
    %4 = math.absf %3 : vector<4x32x768xf32>
    %cst = arith.constant dense<0.000000e+00> : vector<4x32xf32>
    %5 = vector.multi_reduction <add>, %4, %cst [2] : vector<4x32x768xf32> to vector<4x32xf32>
    %cst_3 = arith.constant 9.99999993E-9 : f32
    %6 = vector.broadcast %cst_3 : f32 to vector<4x32xf32>
    %7 = arith.cmpf ogt, %5, %6 : vector<4x32xf32>
    %8 = arith.extui %7 : vector<4x32xi1> to vector<4x32xi32>
    %9 = arith.sitofp %8 : vector<4x32xi32> to vector<4x32xf32>
    %c0_4 = arith.constant 0 : index
    %c0_5 = arith.constant 0 : index
    %10 = vector.load %arg5[%c0_4, %c0_5] : memref<4x1xf32, #tpu.memory_space<vmem>>, vector<4x1xf32>
    %cst_6 = arith.constant dense<0.000000e+00> : vector<4xf32>
    %11 = vector.multi_reduction <add>, %9, %cst_6 [1] : vector<4x32xf32> to vector<4xf32>
    %12 = vector.shape_cast %11 : vector<4xf32> to vector<4x1xf32>
    %13 = arith.addf %10, %12 : vector<4x1xf32>
    %c0_7 = arith.constant 0 : index
    %c0_8 = arith.constant 0 : index
    %14 = vector.load %arg5[%c0_7, %c0_8] : memref<4x1xf32, #tpu.memory_space<vmem>>, vector<4x1xf32>
    tpu.vector_store %arg5[%c0_7, %c0_8], %13 {strides = array<i32>} : memref<4x1xf32, #tpu.memory_space<vmem>>, vector<4x1xf32>,
    %c0_9 = arith.constant 0 : index
    %c0_10 = arith.constant 0 : index
    %15 = vector.load %arg4[%c0_9, %c0_10] : memref<4x768xf32, #tpu.memory_space<vmem>>, vector<4x768xf32>
    %cst_11 = arith.constant dense<0.000000e+00> : vector<4x768xf32>
    %16 = vector.multi_reduction <add>, %3, %cst_11 [1] : vector<4x32x768xf32> to vector<4x768xf32>
    %17 = arith.addf %15, %16 : vector<4x768xf32>
    %c0_12 = arith.constant 0 : index
    %c0_13 = arith.constant 0 : index
    %18 = vector.load %arg4[%c0_12, %c0_13] : memref<4x768xf32, #tpu.memory_space<vmem>>, vector<4x768xf32>
    tpu.vector_store %arg4[%c0_12, %c0_13], %17 {strides = array<i32>} : memref<4x768xf32, #tpu.memory_space<vmem>>, vector<4x768xf32>,
    %c0_i32_14 = arith.constant 0 : i32
    %19 = arith.cmpi eq, %arg1, %c0_i32_14 : i32
    %20 = arith.extui %19 : i1 to i32
    %c0_i32_15 = arith.constant 0 : i32
    %21 = arith.cmpi ne, %20, %c0_i32_15 : i32
    scf.if %21 {
      %c0_16 = arith.constant 0 : index
      %c0_17 = arith.constant 0 : index
      %22 = vector.load %arg5[%c0_16, %c0_17] : memref<4x1xf32, #tpu.memory_space<vmem>>, vector<4x1xf32>
      %cst_18 = arith.constant 1.000000e+00 : f32
      %23 = vector.broadcast %cst_18 : f32 to vector<4x1xf32>
      %24 = arith.maximumf %22, %23 : vector<4x1xf32>
      %c0_19 = arith.constant 0 : index
      %c0_20 = arith.constant 0 : index
      %25 = vector.load %arg4[%c0_19, %c0_20] : memref<4x768xf32, #tpu.memory_space<vmem>>, vector<4x768xf32>
      %26 = vector.broadcast %24 : vector<4x1xf32> to vector<4x768xf32>
      %27 = arith.divf %25, %26 : vector<4x768xf32>
      %c0_21 = arith.constant 0 : index
      %c0_22 = arith.constant 0 : index
      %28 = vector.load %arg3[%c0_21, %c0_22] : memref<4x768xf32, #tpu.memory_space<vmem>>, vector<4x768xf32>
      tpu.vector_store %arg3[%c0_21, %c0_22], %27 {strides = array<i32>} : memref<4x768xf32, #tpu.memory_space<vmem>>, vector<4x768xf32>,
    } else {
    }
    return
  }
  func.func @transform_0(%arg0: i32, %arg1: i32) -> (i32, i32, i32) {
    %c0_i32 = arith.constant 0 : i32
    %c0_i32_0 = arith.constant 0 : i32
    return %arg0, %arg1, %c0_i32 : i32, i32, i32
  }
  func.func @transform_1(%arg0: i32, %arg1: i32) -> (i32, i32) {
    %c0_i32 = arith.constant 0 : i32
    %c0_i32_0 = arith.constant 0 : i32
    return %arg0, %c0_i32 : i32, i32
  }
}

</mosaic_0001>

<bundles_post_ra>
// kernel: tpu_custom_call.1
= control target key start
LH: loop header
LB: loop body
LE: loop exit
PB: predicated region body
PF: predicated region fallthrough
CT: control target
= control target key end

     0   :  { %6 = vsyncpa [#allocation5], 0  ;;  %s1269_s0 = inlined_call_operand.hbm [shape: f32[4,32,768], index: 0, kind: input, shape index: {}]   ;;  %s1270_s1 = inlined_call_operand.hbm [shape: f32[4,768], index: 1, kind: output, shape index: {}]  }
   0x1   :  { %7 = vsyncpa [#allocation6], 0  ;;  %s910_s6 = smov [#allocation4]   ;;  %s862_s10 = scalar_lea.hbm %s1269_s0, 12288 }
   0x2   :  { %s13_s7 = sshll.u32 %s910_s6, 4  ;;  %p863_p0 = scmp.ne.s32.totalorder %s1269_s0, %s862_s10  ;;  %s14_s7 = int_to_ptr.vmem [resolvable:$true] %s13_s7 }
   0x3   :  { %p866_p1 = scmp.lt.u32.totalorder %s862_s10, %s1269_s0 }
   0x5   :  { %p868_p2 = pnand %p866_p1, %p863_p0 }
   0x7   :  { %871 = shalt.err (!%p868_p2)
}
   0x8   :  { %s872_s15 = scalar_lea.vmem %s14_s7, 12288  ;;  %p877_p4 = scmp.lt.s32.totalorder %s14_s7, %s14_s7 }
   0x9   :  { %p873_p3 = scmp.ne.s32.totalorder %s14_s7, %s872_s15  ;;  %p878_p5 = scmp.lt.s32.totalorder %s872_s15, %s872_s15 }
   0xb   :  { %p879_p6 = por %p878_p5, %p877_p4 }
   0xd   :  { %p880_p7 = pnand %p879_p6, %p873_p3 }
   0xf   :  { %883 = shalt.err (!%p880_p7)
}
  0x10   :  { %s911_s16 = smov 768   ;;  %s912_s17 = smov 48  }
  0x11   :  { %19 = dma.hbm_to_vmem [thread:$0]  %s1269_s0, 12288, %s14_s7, [#allocation5], %s911_s16, %s911_s16, %s912_s17  }
  0x12   :  { %906 = dma.done.wait [#allocation5], 12288  }
  0x13   :  { %907 = vsyncadd [#allocation5], 4294955008  ;;  %v56_v0 = vld [vmem:[#allocation4 + $0xc0] sm:$0xff]  ;;  %v57_v1 = vld [vmem:[#allocation4 + $0xc8] sm:$0xff]  ;;  %vm485_vm0 = vcmask 1041409   ;;  %vm487_vm1 = vcmask 1042434  }
  0x14   :  { %v58_v2 = vld [vmem:[#allocation4 + $0xd0] sm:$0xff]  ;;  %v59_v3 = vld [vmem:[#allocation4 + $0xd8] sm:$0xff]  ;;  %v60_v4 = vld [vmem:[#allocation4 + $0xe0] sm:$0xff]  ;;  %v152_v6 = vand.u32 2147483647, %v56_v0  ;;  %vm1272_vm2 = vcmask 1043459  }
  0x15   :  { %v61_v5 = vld [vmem:[#allocation4 + $0xe8] sm:$0xff]  ;;  %v62_v7 = vld [vmem:[#allocation4 + $0xf0] sm:$0xff]  ;;  %v63_v8 = vld [vmem:[#allocation4 + $0xf8] sm:$0xff]  ;;  %v153_v10 = vand.u32 2147483647, %v57_v1  ;;  %vm756_vm3 = vcmask 1045509  }
  0x16   :  { %v939_v9 = vld [vmem:[#allocation4 + $0x100] sm:$0xff]  ;;  %v941_v11 = vld [vmem:[#allocation4 + $0x108] sm:$0xff]  ;;  %v154_v12 = vand.u32 2147483647, %v58_v2  ;;  %v556_v13 = vadd.f32 %v62_v7, %v56_v0  ;;  %v943_v14 = vadd.f32 %v63_v8, %v57_v1  ;;  %v948_v16 = vld [vmem:[#allocation4 + $0x110] sm:$0xff]  ;;  %vm760_vm4 = vcmask 1046534  }
  0x17   :  { %v946_v15 = vadd.f32 %v939_v9, %v58_v2  ;;  %v950_v17 = vld [vmem:[#allocation4 + $0x118] sm:$0xff]  ;;  %v155_v18 = vand.u32 2147483647, %v59_v3  ;;  %v156_v19 = vand.u32 2147483647, %v60_v4  ;;  %v252_v20 = vadd.f32 %v153_v10, %v152_v6  ;;  %v32_v25 = vld [vmem:[#allocation4] sm:$0xff] }
  0x18   :  { %v157_v21 = vand.u32 2147483647, %v61_v5  ;;  %v953_v22 = vadd.f32 %v941_v11, %v59_v3  ;;  %v956_v23 = vadd.f32 %v948_v16, %v60_v4  ;;  %v959_v24 = vadd.f32 %v950_v17, %v61_v5  ;;  %v33_v26 = vld [vmem:[#allocation4 + $0x8] sm:$0xff]  ;;  %v34_v27 = vld [vmem:[#allocation4 + $0x10] sm:$0xff]  ;;  %v35_v29 = vld [vmem:[#allocation4 + $0x18] sm:$0xff]  ;;  %s916_s0 = smov [#allocation7]  }
  0x19   :  { %v253_v28 = vadd.f32 %v252_v20, %v154_v12  ;;  %v36_v30 = vld [vmem:[#allocation4 + $0x20] sm:$0xff]  ;;  %v37_v31 = vld [vmem:[#allocation4 + $0x28] sm:$0xff]  ;;  %v128_v32 = vand.u32 2147483647, %v32_v25  ;;  %v38_v33 = vld [vmem:[#allocation4 + $0x30] sm:$0xff]  ;;  %vm1271_vm5 = vcmask 3072  }
  0x1a   :  { %v39_v34 = vld [vmem:[#allocation4 + $0x38] sm:$0xff]  ;;  %v129_v35 = vand.u32 2147483647, %v33_v26  ;;  %v158_v36 = vand.u32 2147483647, %v62_v7  ;;  %v40_v38 = vld [vmem:[#allocation4 + $0x40] sm:$0xff]  ;;  %v963_v42 = vadd.f32 %v38_v33, %v32_v25 }
  0x1b   :  { %v254_v37 = vadd.f32 %v253_v28, %v155_v18  ;;  %v41_v39 = vld [vmem:[#allocation4 + $0x48] sm:$0xff]  ;;  %v961_v40 = vld [vmem:[#allocation4 + $0x50] sm:$0xff]  ;;  %v130_v41 = vand.u32 2147483647, %v34_v27  ;;  %v965_v43 = vadd.f32 %v39_v34, %v33_v26  ;;  %v131_v44 = vand.u32 2147483647, %v35_v29 }
  0x1c   :  { %v132_v45 = vand.u32 2147483647, %v36_v30  ;;  %v133_v46 = vand.u32 2147483647, %v37_v31  ;;  %v224_v47 = vadd.f32 %v129_v35, %v128_v32  ;;  %v967_v49 = vld [vmem:[#allocation4 + $0x58] sm:$0xff]  ;;  %v969_v50 = vadd.f32 %v40_v38, %v34_v27  ;;  %v68_v60 = vld [vmem:[#allocation4 + $0x120] sm:$0xff] }
  0x1d   :  { %v255_v48 = vadd.f32 %v254_v37, %v156_v19  ;;  %v971_v51 = vadd.f32 %v41_v39, %v35_v29  ;;  %v974_v52 = vadd.f32 %v961_v40, %v36_v30  ;;  %v977_v54 = vadd.f32 %v967_v49, %v37_v31  ;;  %v69_v1 = vld [vmem:[#allocation4 + $0x128] sm:$0xff]  ;;  %v70_v2 = vld [vmem:[#allocation4 + $0x130] sm:$0xff]  ;;  %v72_v12 = vld [vmem:[#allocation4 + $0x140] sm:$0xff]  ;;  %s826_s20 = sshll.u32 %s916_s0, 4  ;;  %s827_s20 = int_to_ptr.vmem [resolvable:$true] %s826_s20 }
  0x1e   :  { %v225_v53 = vadd.f32 %v224_v47, %v130_v41  ;;  %v159_v55 = vand.u32 2147483647, %v63_v8  ;;  %v160_v56 = vand.u32 2147483647, %v939_v9  ;;  %v161_v58 = vand.u32 2147483647, %v941_v11  ;;  %p889_p9 = scmp.lt.s32.totalorder %s827_s20, %s827_s20 }
  0x1f   :  { %v256_v57 = vadd.f32 %v255_v48, %v157_v21  ;;  %v162_v59 = vand.u32 2147483647, %v948_v16  ;;  %v134_v63 = vand.u32 2147483647, %v38_v33  ;;  %v135_v0 = vand.u32 2147483647, %v39_v34 }
  0x20   :  { %v226_v61 = vadd.f32 %v225_v53, %v131_v44  ;;  %v259_v62 = vadd.f32 %v159_v55, %v158_v36  ;;  %v163_v3 = vand.u32 2147483647, %v950_v17  ;;  %v136_v4 = vand.u32 2147483647, %v40_v38  ;;  %v71_v11 = vld [vmem:[#allocation4 + $0x138] sm:$0xff]  ;;  %v45_v27 = vld [vmem:[#allocation4 + $0x68] sm:$0xff] }
  0x21   :  { %257 = vadd.xlane.f32.xlu1 %v256_v57  ;;  %v137_v5 = vand.u32 2147483647, %v41_v39  ;;  %v983_v6 = vadd.f32 %v556_v13, %v68_v60  ;;  %v138_v9 = vand.u32 2147483647, %v961_v40  ;;  %v231_v10 = vadd.f32 %v135_v0, %v134_v63  ;;  %v44_v13 = vld [vmem:[#allocation4 + $0x60] sm:$0xff]  ;;  %v73_v28 = vld [vmem:[#allocation4 + $0x148] sm:$0xff] }
  0x22   :  { %v227_v7 = vadd.f32 %v226_v61, %v132_v45  ;;  %v260_v8 = vadd.f32 %v259_v62, %v160_v56  ;;  %v164_v16 = vand.u32 2147483647, %v68_v60  ;;  %v165_v18 = vand.u32 2147483647, %v69_v1  ;;  %v46_v33 = vld [vmem:[#allocation4 + $0x70] sm:$0xff]  ;;  %v47_v37 = vld [vmem:[#allocation4 + $0x78] sm:$0xff] }
  0x23   :  { %v166_v19 = vand.u32 2147483647, %v70_v2  ;;  %v987_v20 = vadd.f32 %v943_v14, %v69_v1  ;;  %v139_v17 = vand.u32 2147483647, %v967_v49  ;;  %v232_v26 = vadd.f32 %v231_v10, %v136_v4  ;;  %v48_v38 = vld [vmem:[#allocation4 + $0x80] sm:$0xff]  ;;  %v49_v47 = vld [vmem:[#allocation4 + $0x88] sm:$0xff] }
  0x24   :  { %v228_v21 = vadd.f32 %v227_v7, %v133_v46  ;;  %v261_v25 = vadd.f32 %v260_v8, %v161_v58  ;;  %v167_v29 = vand.u32 2147483647, %v71_v11  ;;  %v168_v30 = vand.u32 2147483647, %v72_v12  ;;  %v86_v49 = vld [vmem:[#allocation4 + $0x1b0] sm:$0xff]  ;;  %v87_v53 = vld [vmem:[#allocation4 + $0x1b8] sm:$0xff] }
  0x25   :  { %v266_v31 = vadd.f32 %v165_v18, %v164_v16  ;;  %v991_v32 = vadd.f32 %v946_v15, %v70_v2  ;;  %v233_v35 = vadd.f32 %v232_v26, %v137_v5  ;;  %v994_v14 = vadd.f32 %v953_v22, %v71_v11  ;;  %v88_v57 = vld [vmem:[#allocation4 + $0x1c0] sm:$0xff]  ;;  %v89_v58 = vld [vmem:[#allocation4 + $0x1c8] sm:$0xff]  ;;  %v90_v62 = vld [vmem:[#allocation4 + $0x1d0] sm:$0xff]  ;;  %s884_s21 = scalar_lea.vmem %s827_s20, 384 }
  0x26   :  { %229 = vadd.xlane.f32.xlu0 %v228_v21  ;;  %v262_v34 = vadd.f32 %v261_v25, %v162_v59  ;;  %v997_v36 = vadd.f32 %v956_v23, %v72_v12  ;;  %v1000_v40 = vadd.f32 %v959_v24, %v73_v28  ;;  %v140_v41 = vand.u32 2147483647, %v44_v13  ;;  %v91_v63 = vld [vmem:[#allocation4 + $0x1d8] sm:$0xff]  ;;  %v80_v0 = vld [vmem:[#allocation4 + $0x180] sm:$0xff]  ;;  %v81_v5 = vld [vmem:[#allocation4 + $0x188] sm:$0xff]  ;;  %p885_p8 = scmp.ne.s32.totalorder %s827_s20, %s884_s21  ;;  %p890_p10 = scmp.lt.s32.totalorder %s884_s21, %s884_s21 }
  0x27   :  { %v267_v39 = vadd.f32 %v266_v31, %v166_v19  ;;  %v141_v44 = vand.u32 2147483647, %v45_v27  ;;  %v234_v45 = vadd.f32 %v233_v35, %v138_v9  ;;  %v169_v46 = vand.u32 2147483647, %v73_v28  ;;  %v83_v7 = vld [vmem:[#allocation4 + $0x198] sm:$0xff]  ;;  %v84_v18 = vld [vmem:[#allocation4 + $0x1a0] sm:$0xff] }
  0x28   :  { %v263_v15 = vadd.f32 %v262_v34, %v163_v3  ;;  %v142_v48 = vand.u32 2147483647, %v46_v33  ;;  %v143_v55 = vand.u32 2147483647, %v47_v37  ;;  %v144_v56 = vand.u32 2147483647, %v48_v38  ;;  %p891_p11 = por %p890_p10, %p889_p9 }
  0x29   :  { %v268_v22 = vadd.f32 %v267_v39, %v167_v29  ;;  %v238_v23 = vadd.f32 %v141_v44, %v140_v41  ;;  %v235_v59 = vadd.f32 %v234_v45, %v139_v17  ;;  %v1003_v24 = vadd.f32 %v963_v42, %v44_v13  ;;  %v82_v42 = vld [vmem:[#allocation4 + $0x190] sm:$0xff]  ;;  %v75_v31 = vld [vmem:[#allocation4 + $0x158] sm:$0xff]  ;;  %v85_v35 = vld [vmem:[#allocation4 + $0x1a8] sm:$0xff] }
  0x2a   :  { %264 = vadd.xlane.f32.xlu1 %v263_v15  ;;  %v1006_v60 = vadd.f32 %v965_v43, %v45_v27  ;;  %v1009_v61 = vadd.f32 %v969_v50, %v46_v33  ;;  %v1012_v3 = vadd.f32 %v971_v51, %v47_v37  ;;  %v1015_v4 = vadd.f32 %v974_v52, %v48_v38  ;;  %v76_v33 = vld [vmem:[#allocation4 + $0x160] sm:$0xff]  ;;  %p892_p12 = pnand %p891_p11, %p885_p8 }
  0x2b   :  { %v269_v1 = vadd.f32 %v268_v22, %v168_v30  ;;  %v239_v2 = vadd.f32 %v238_v23, %v142_v48  ;;  %236 = vadd.xlane.f32.xlu0 %v235_v59  ;;  %v1018_v43 = vadd.f32 %v977_v54, %v49_v47  ;;  %v182_v50 = vand.u32 2147483647, %v86_v49  ;;  %v74_v30 = vld [vmem:[#allocation4 + $0x150] sm:$0xff] }
  0x2c   :  { %v183_v8 = vand.u32 2147483647, %v87_v53  ;;  %v184_v9 = vand.u32 2147483647, %v88_v57  ;;  %v145_v11 = vand.u32 2147483647, %v49_v47  ;;  %v1020_v29 = vadd.f32 %v86_v49, %v80_v0 }
  0x2d   :  { %v270_v10 = vadd.f32 %v269_v1, %v169_v46  ;;  %v240_v12 = vadd.f32 %v239_v2, %v143_v55  ;;  %v185_v16 = vand.u32 2147483647, %v89_v58  ;;  %v186_v51 = vand.u32 2147483647, %v90_v62  ;;  %v77_v46 = vld [vmem:[#allocation4 + $0x168] sm:$0xff]  ;;  %v78_v23 = vld [vmem:[#allocation4 + $0x170] sm:$0xff] }
  0x2e   :  { %v287_v19 = vadd.f32 %v183_v8, %v182_v50  ;;  %v176_v21 = vand.u32 2147483647, %v80_v0  ;;  %v177_v52 = vand.u32 2147483647, %v81_v5  ;;  %v187_v17 = vand.u32 2147483647, %v91_v63 }
  0x2f   :  { %271 = vadd.xlane.f32.xlu1 %v270_v10  ;;  %v241_v25 = vadd.f32 %v240_v12, %v144_v56  ;;  %v178_v26 = vand.u32 2147483647, %v82_v42  ;;  %v179_v13 = vand.u32 2147483647, %v83_v7  ;;  %v180_v54 = vand.u32 2147483647, %v84_v18 }
  0x30   :  { %v288_v27 = vadd.f32 %v287_v19, %v184_v9  ;;  %v280_v28 = vadd.f32 %v177_v52, %v176_v21  ;;  %v1022_v37 = vadd.f32 %v87_v53, %v81_v5  ;;  %v1024_v38 = vadd.f32 %v88_v57, %v82_v42  ;;  %v79_v0 = vld [vmem:[#allocation4 + $0x178] sm:$0xff] }
  0x31   :  { %v242_v34 = vadd.f32 %v241_v25, %v145_v11  ;;  %v1026_v39 = vadd.f32 %v89_v58, %v83_v7  ;;  %v1028_v15 = vadd.f32 %v90_v62, %v84_v18  ;;  %v1030_v45 = vadd.f32 %v91_v63, %v85_v35  ;;  %v52_v25 = vld [vmem:[#allocation4 + $0xa0] sm:$0xff] }
  0x32   :  { %v289_v41 = vadd.f32 %v288_v27, %v185_v16  ;;  %v281_v44 = vadd.f32 %v280_v28, %v178_v26  ;;  %v170_v47 = vand.u32 2147483647, %v74_v30  ;;  %v171_v48 = vand.u32 2147483647, %v75_v31 }
  0x33   :  { %243 = vadd.xlane.f32.xlu0 %v242_v34  ;;  %v172_v49 = vand.u32 2147483647, %v76_v33  ;;  %v1033_v22 = vadd.f32 %v983_v6, %v74_v30  ;;  %v181_v55 = vand.u32 2147483647, %v85_v35  ;;  %v173_v57 = vand.u32 2147483647, %v77_v46 }
  0x34   :  { %v290_v53 = vadd.f32 %v289_v41, %v186_v51  ;;  %v282_v56 = vadd.f32 %v281_v44, %v179_v13  ;;  %v273_v58 = vadd.f32 %v171_v48, %v170_v47  ;;  %v1036_v59 = vadd.f32 %v987_v20, %v75_v31  ;;  %v51_v51 = vld [vmem:[#allocation4 + $0x98] sm:$0xff]  ;;  %v53_v30 = vld [vmem:[#allocation4 + $0xa8] sm:$0xff]  ;;  %v54_v31 = vld [vmem:[#allocation4 + $0xb0] sm:$0xff] }
  0x35   :  { %v576_v1 = vadd.f32 %v991_v32, %v76_v33  ;;  %v585_v2 = vadd.f32 %v994_v14, %v77_v46  ;;  %v174_v5 = vand.u32 2147483647, %v78_v23  ;;  %v594_v6 = vadd.f32 %v997_v36, %v78_v23  ;;  %v50_v32 = vld [vmem:[#allocation4 + $0x90] sm:$0xff]  ;;  %v55_v23 = vld [vmem:[#allocation4 + $0xb8] sm:$0xff] }
  0x36   :  { %v291_v62 = vadd.f32 %v290_v53, %v187_v17  ;;  %v283_v63 = vadd.f32 %v282_v56, %v180_v54  ;;  %v274_v42 = vadd.f32 %v273_v58, %v172_v49  ;;  %v603_v9 = vadd.f32 %v1000_v40, %v79_v0 }
  0x37   :  { %v577_v50 = vrot.slane %v576_v1, 4  ;;  %v586_v8 = vrot.slane %v585_v2, 4  ;;  %v175_v10 = vand.u32 2147483647, %v79_v0  ;;  %v595_v11 = vrot.slane %v594_v6, 4 }
  0x38   :  { %292 = vadd.xlane.f32.xlu1 %v291_v62  ;;  %v284_v7 = vadd.f32 %v283_v63, %v181_v55  ;;  %v275_v20 = vadd.f32 %v274_v42, %v173_v57  ;;  %v604_v18 = vrot.slane %v603_v9, 4  ;;  %v146_v13 = vand.u32 2147483647, %v50_v32 }
  0x39   :  { %v578_v12 = vadd.f32 %v577_v50, %v576_v1  ;;  %v587_v16 = vadd.f32 %v586_v8, %v585_v2  ;;  %v596_v19 = vadd.f32 %v595_v11, %v594_v6  ;;  %v147_v27 = vand.u32 2147483647, %v51_v51 }
  0x3a   :  { %285 = vadd.xlane.f32.xlu0 %v284_v7  ;;  %v276_v14 = vadd.f32 %v275_v20, %v174_v5  ;;  %v605_v36 = vadd.f32 %v604_v18, %v603_v9  ;;  %v148_v34 = vand.u32 2147483647, %v52_v25  ;;  %v149_v47 = vand.u32 2147483647, %v53_v30  ;;  %v1064_v18 = vld [vmem:[#allocation4 + $0x240] sm:$0xff] }
  0x3b   :  { %v579_v21 = vrot.slane %v578_v12, 2  ;;  %v588_v52 = vrot.slane %v587_v16, 2  ;;  %v597_v26 = vrot.slane %v596_v19, 2  ;;  %v150_v48 = vand.u32 2147483647, %v54_v31 }
  0x3c   :  { %v277_v17 = vadd.f32 %v276_v14, %v175_v10  ;;  %v606_v28 = vrot.slane %v605_v36, 2  ;;  %v245_v49 = vadd.f32 %v147_v27, %v146_v13  ;;  %v1047_v57 = vadd.f32 %v1003_v24, %v50_v32  ;;  %v1076_v27 = vld [vmem:[#allocation4 + $0x268] sm:$0xff] }
  0x3d   :  { %v580_v40 = vadd.f32 %v579_v21, %v578_v12  ;;  %v589_v54 = vadd.f32 %v588_v52, %v587_v16  ;;  %v598_v33 = vadd.f32 %v597_v26, %v596_v19  ;;  %v1052_v63 = vadd.f32 %v1006_v60, %v51_v51  ;;  %v1068_v19 = vld [vmem:[#allocation4 + $0x250] sm:$0xff] }
  0x3e   :  { %278 = vadd.xlane.f32.xlu1 %v277_v17  ;;  %v607_v44 = vadd.f32 %v606_v28, %v605_v36  ;;  %v246_v62 = vadd.f32 %v245_v49, %v148_v34  ;;  %v522_v0 = vadd.f32 %v1009_v61, %v52_v25  ;;  %v531_v5 = vadd.f32 %v1012_v3, %v53_v30  ;;  %v1066_v3 = vld [vmem:[#allocation4 + $0x248] sm:$0xff]  ;;  %v1070_v36 = vld [vmem:[#allocation4 + $0x258] sm:$0xff]  ;;  %v1072_v25 = vld [vmem:[#allocation4 + $0x260] sm:$0xff] }
  0x3f   :  { %v581_v35 = vrot.slane %v580_v40, 1  ;;  %v590_v41 = vrot.slane %v589_v54, 1  ;;  %v599_v46 = vrot.slane %v598_v33, 1  ;;  %v151_v42 = vand.u32 2147483647, %v55_v23 }
  0x40   :  { %v608_v56 = vrot.slane %v607_v44, 1  ;;  %v247_v6 = vadd.f32 %v246_v62, %v149_v47  ;;  %v523_v7 = vrot.slane %v522_v0, 4  ;;  %v540_v24 = vadd.f32 %v1015_v4, %v54_v31  ;;  %v93_v31 = vld [vmem:[#allocation4 + $0x1e8] sm:$0xff] }
  0x41   :  { %v1042_v53 = vadd.f32 %v581_v35, %v580_v40  ;;  %v1044_v55 = vadd.f32 %v590_v41, %v589_v54  ;;  %v1049_v58 = vadd.f32 %v599_v46, %v598_v33  ;;  %v532_v8 = vrot.slane %v531_v5, 4  ;;  %v92_v40 = vld [vmem:[#allocation4 + $0x1e0] sm:$0xff]  ;;  %v94_v33 = vld [vmem:[#allocation4 + $0x1f0] sm:$0xff]  ;;  %v95_v46 = vld [vmem:[#allocation4 + $0x1f8] sm:$0xff] }
  0x42   :  { %v1055_v1 = vadd.f32 %v608_v56, %v607_v44  ;;  %v248_v60 = vadd.f32 %v247_v6, %v150_v48  ;;  %v524_v9 = vadd.f32 %v523_v7, %v522_v0  ;;  %v541_v10 = vrot.slane %v540_v24, 4  ;;  %v96_v56 = vld [vmem:[#allocation4 + $0x200] sm:$0xff] }
  0x43   :  { %v746_v2 = vcombine.low %v1042_v53, %v1044_v55  ;;  %v533_v61 = vadd.f32 %v532_v8, %v531_v5  ;;  %v549_v20 = vadd.f32 %v1018_v43, %v55_v23  ;;  %v200_v43 = vand.u32 2147483647, %v1064_v18 }
  0x44   :  { %v747_v50 = vcombine.low %v1049_v58, %v1055_v1  ;;  %v249_v11 = vadd.f32 %v248_v60, %v151_v42  ;;  %v525_v12 = vrot.slane %v524_v9, 2  ;;  %v542_v16 = vadd.f32 %v541_v10, %v540_v24  ;;  %v98_v60 = vld [vmem:[#allocation4 + $0x210] sm:$0xff] }
  0x45   :  { %v534_v32 = vrot.slane %v533_v61, 2  ;;  %v550_v51 = vrot.slane %v549_v20, 4  ;;  %v201_v17 = vand.u32 2147483647, %v1066_v3  ;;  %v202_v30 = vand.u32 2147483647, %v1068_v19 }
  0x46   :  { %v526_v4 = vadd.f32 %v525_v12, %v524_v9  ;;  %v543_v14 = vrot.slane %v542_v16, 2  ;;  %250 = vadd.xlane.f32.xlu0 %v249_v11  ;;  %v203_v41 = vand.u32 2147483647, %v1070_v36  ;;  %v204_v44 = vand.u32 2147483647, %v1072_v25  ;;  %v99_v11 = vld [vmem:[#allocation4 + $0x218] sm:$0xff] }
  0x47   :  { %v535_v21 = vadd.f32 %v534_v32, %v533_v61  ;;  %v551_v52 = vadd.f32 %v550_v51, %v549_v20  ;;  %v308_v49 = vadd.f32 %v201_v17, %v200_v43  ;;  %v188_v23 = vand.u32 2147483647, %v92_v40  ;;  %v100_v12 = vld [vmem:[#allocation4 + $0x220] sm:$0xff]  ;;  %v97_v51 = vld [vmem:[#allocation4 + $0x208] sm:$0xff] }
  0x48   :  { %v527_v26 = vrot.slane %v526_v4, 1  ;;  %v544_v13 = vadd.f32 %v543_v14, %v542_v16  ;;  %v205_v0 = vand.u32 2147483647, %v1076_v27  ;;  %v189_v5 = vand.u32 2147483647, %v93_v31 }
  0x49   :  { %v536_v54 = vrot.slane %v535_v21, 1  ;;  %v552_v28 = vrot.slane %v551_v52, 2  ;;  %v190_v42 = vand.u32 2147483647, %v94_v33  ;;  %v309_v24 = vadd.f32 %v308_v49, %v202_v30  ;;  %v102_v30 = vld [vmem:[#allocation4 + $0x230] sm:$0xff] }
  0x4a   :  { %v1079_v34 = vadd.f32 %v527_v26, %v526_v4  ;;  %v545_v35 = vrot.slane %v544_v13, 1  ;;  %v191_v8 = vand.u32 2147483647, %v95_v46  ;;  %v192_v9 = vand.u32 2147483647, %v96_v56 }
  0x4b   :  { %v1083_v47 = vadd.f32 %v536_v54, %v535_v21  ;;  %v553_v48 = vadd.f32 %v552_v28, %v551_v52  ;;  %v294_v10 = vadd.f32 %v189_v5, %v188_v23  ;;  %v611_v61 = vadd.f32 %v1020_v29, %v92_v40  ;;  %v101_v21 = vld [vmem:[#allocation4 + $0x228] sm:$0xff] }
  0x4c   :  { %v1085_v62 = vadd.f32 %v545_v35, %v544_v13  ;;  %v620_v20 = vadd.f32 %v1022_v37, %v93_v31  ;;  %v310_v32 = vadd.f32 %v309_v24, %v203_v41  ;;  %v629_v4 = vadd.f32 %v1024_v38, %v94_v33  ;;  %v103_v41 = vld [vmem:[#allocation4 + $0x238] sm:$0xff] }
  0x4d   :  { %v554_v6 = vrot.slane %v553_v48, 1  ;;  %v743_v7 = vcombine.low %v1079_v34, %v1083_v47  ;;  %v638_v14 = vadd.f32 %v1026_v39, %v95_v46  ;;  %v295_v52 = vadd.f32 %v294_v10, %v190_v42 }
  0x4e   :  { %v647_v43 = vadd.f32 %v1028_v15, %v96_v56  ;;  %v656_v17 = vadd.f32 %v1030_v45, %v97_v51  ;;  %v194_v26 = vand.u32 2147483647, %v98_v60  ;;  %v311_v37 = vadd.f32 %v310_v32, %v204_v44 }
  0x4f   :  { %v1092_v16 = vadd.f32 %v554_v6, %v553_v48  ;;  %v195_v13 = vand.u32 2147483647, %v99_v11  ;;  %v196_v40 = vand.u32 2147483647, %v100_v12  ;;  %v193_v54 = vand.u32 2147483647, %v97_v51 }
  0x50   :  { %v296_v28 = vadd.f32 %v295_v52, %v191_v8  ;;  %v197_v31 = vand.u32 2147483647, %v101_v21  ;;  %v312_v38 = vadd.f32 %v311_v37, %v205_v0  ;;  %v1100_v39 = vadd.f32 %v611_v61, %v98_v60  ;;  %v110_v8 = vld [vmem:[#allocation4 + $0x270] sm:$0xff]  ;;  %v111_v60 = vld [vmem:[#allocation4 + $0x278] sm:$0xff] }
  0x51   :  { %v744_v29 = vcombine.low %v1085_v62, %v1092_v16  ;;  %v301_v33 = vadd.f32 %v195_v13, %v194_v26  ;;  %v1102_v35 = vadd.f32 %v620_v20, %v99_v11  ;;  %v1104_v45 = vadd.f32 %v629_v4, %v100_v12  ;;  %v112_v20 = vld [vmem:[#allocation4 + $0x280] sm:$0xff]  ;;  %v114_v52 = vld [vmem:[#allocation4 + $0x290] sm:$0xff] }
  0x52   :  { %v297_v15 = vadd.f32 %v296_v28, %v192_v9  ;;  %v1106_v46 = vadd.f32 %v638_v14, %v101_v21  ;;  %v648_v48 = vadd.f32 %v647_v43, %v102_v30  ;;  %313 = vadd.xlane.f32.xlu1 %v312_v38  ;;  %v198_v44 = vand.u32 2147483647, %v102_v30  ;;  %v113_v14 = vld [vmem:[#allocation4 + $0x288] sm:$0xff] }
  0x53   :  { %v302_v49 = vadd.f32 %v301_v33, %v196_v40  ;;  %v657_v56 = vadd.f32 %v656_v17, %v103_v41  ;;  %v199_v42 = vand.u32 2147483647, %v103_v41  ;;  %v206_v32 = vand.u32 2147483647, %v110_v8  ;;  %v117_v28 = vld [vmem:[#allocation4 + $0x2a8] sm:$0xff] }
  0x54   :  { %v298_v23 = vadd.f32 %v297_v15, %v193_v54  ;;  %v649_v5 = vrot.slane %v648_v48, 4  ;;  %v207_v51 = vand.u32 2147483647, %v111_v60  ;;  %v208_v43 = vand.u32 2147483647, %v112_v20  ;;  %v116_v54 = vld [vmem:[#allocation4 + $0x2a0] sm:$0xff] }
  0x55   :  { %v303_v0 = vadd.f32 %v302_v49, %v197_v31  ;;  %v658_v6 = vrot.slane %v657_v56, 4  ;;  %v209_v37 = vand.u32 2147483647, %v113_v14  ;;  %v664_v40 = vadd.f32 %v110_v8, %v1064_v18  ;;  %v115_v31 = vld [vmem:[#allocation4 + $0x298] sm:$0xff]  ;;  %v118_v15 = vld [vmem:[#allocation4 + $0x2b0] sm:$0xff] }
  0x56   :  { %299 = vadd.xlane.f32.xlu0 %v298_v23  ;;  %v650_v24 = vadd.f32 %v649_v5, %v648_v48  ;;  %v315_v13 = vadd.f32 %v207_v51, %v206_v32  ;;  %v210_v38 = vand.u32 2147483647, %v114_v52  ;;  %v673_v33 = vadd.f32 %v111_v60, %v1066_v3  ;;  %v120_v5 = vld [vmem:[#allocation4 + $0x2c0] sm:$0xff]  ;;  %v125_v32 = vld [vmem:[#allocation4 + $0x2e8] sm:$0xff] }
  0x57   :  { %v304_v9 = vadd.f32 %v303_v0, %v198_v44  ;;  %v659_v10 = vadd.f32 %v658_v6, %v657_v56  ;;  %v682_v44 = vadd.f32 %v112_v20, %v1068_v19  ;;  %v691_v49 = vadd.f32 %v113_v14, %v1070_v36  ;;  %v119_v56 = vld [vmem:[#allocation4 + $0x2b8] sm:$0xff]  ;;  %v122_v19 = vld [vmem:[#allocation4 + $0x2d0] sm:$0xff]  ;;  %v124_v36 = vld [vmem:[#allocation4 + $0x2e0] sm:$0xff] }
  0x58   :  { %v651_v61 = vrot.slane %v650_v24, 2  ;;  %v316_v48 = vadd.f32 %v315_v13, %v208_v43  ;;  %v700_v23 = vadd.f32 %v114_v52, %v1072_v25  ;;  %v709_v18 = vadd.f32 %v115_v31, %v1076_v27 }
  0x59   :  { %v305_v11 = vadd.f32 %v304_v9, %v199_v42  ;;  %v660_v12 = vrot.slane %v659_v10, 2  ;;  %v212_v42 = vand.u32 2147483647, %v116_v54  ;;  %v213_v0 = vand.u32 2147483647, %v117_v28 }
  0x5a   :  { %v652_v4 = vadd.f32 %v651_v61, %v650_v24  ;;  %v211_v3 = vand.u32 2147483647, %v115_v31  ;;  %v317_v24 = vadd.f32 %v316_v48, %v209_v37  ;;  %v214_v8 = vand.u32 2147483647, %v118_v15  ;;  %v123_v61 = vld [vmem:[#allocation4 + $0x2d8] sm:$0xff] }
  0x5b   :  { %v661_v21 = vadd.f32 %v660_v12, %v659_v10  ;;  %306 = vadd.xlane.f32.xlu1 %v305_v11  ;;  %v215_v60 = vand.u32 2147483647, %v119_v56  ;;  %v322_v9 = vadd.f32 %v213_v0, %v212_v42  ;;  %v665_v10 = vadd.f32 %v664_v40, %v116_v54  ;;  %v121_v11 = vld [vmem:[#allocation4 + $0x2c8] sm:$0xff]  ;;  %v126_v40 = vld [vmem:[#allocation4 + $0x2f0] sm:$0xff]  ;;  %v127_v31 = vld [vmem:[#allocation4 + $0x2f8] sm:$0xff] }
  0x5c   :  { %v653_v17 = vrot.slane %v652_v4, 1  ;;  %v318_v20 = vadd.f32 %v317_v24, %v210_v38  ;;  %v216_v25 = vand.u32 2147483647, %v120_v5  ;;  %v674_v12 = vadd.f32 %v673_v33, %v117_v28 }
  0x5d   :  { %v662_v26 = vrot.slane %v661_v21, 1  ;;  %v683_v27 = vadd.f32 %v682_v44, %v118_v15  ;;  %v323_v51 = vadd.f32 %v322_v9, %v214_v8  ;;  %v701_v14 = vadd.f32 %v700_v23, %v120_v5 }
  0x5e   :  { %v1109_v30 = vadd.f32 %v653_v17, %v652_v4  ;;  %v692_v4 = vadd.f32 %v691_v49, %v119_v56  ;;  %v319_v52 = vadd.f32 %v318_v20, %v211_v3  ;;  %v218_v43 = vand.u32 2147483647, %v122_v19 }
  0x5f   :  { %v1112_v41 = vadd.f32 %v662_v26, %v661_v21  ;;  %v710_v21 = vadd.f32 %v709_v18, %v121_v11  ;;  %v219_v17 = vand.u32 2147483647, %v123_v61  ;;  %v220_v26 = vand.u32 2147483647, %v124_v36 }
  0x60   :  { %v217_v37 = vand.u32 2147483647, %v121_v11  ;;  %v324_v13 = vadd.f32 %v323_v51, %v215_v60  ;;  %v221_v54 = vand.u32 2147483647, %v125_v32  ;;  %320 = vadd.xlane.f32.xlu0 %v319_v52  ;;  %v1120_v48 = vadd.f32 %v665_v10, %v122_v19 }
  0x61   :  { %v750_v6 = vcombine.low %v1109_v30, %v1112_v41  ;;  %v329_v38 = vadd.f32 %v219_v17, %v218_v43  ;;  %v1122_v28 = vadd.f32 %v674_v12, %v123_v61  ;;  %v684_v33 = vadd.f32 %v683_v27, %v124_v36 }
  0x62   :  { %v325_v15 = vadd.f32 %v324_v13, %v216_v25  ;;  %v693_v44 = vadd.f32 %v692_v4, %v125_v32  ;;  %v702_v49 = vadd.f32 %v701_v14, %v126_v40  ;;  %v711_v56 = vadd.f32 %v710_v21, %v127_v31 }
  0x63   :  { %v222_v23 = vand.u32 2147483647, %v126_v40  ;;  %v330_v18 = vadd.f32 %v329_v38, %v220_v26  ;;  %v559_v5 = vrot.slane %v1033_v22, 4  ;;  %v568_v24 = vrot.slane %v1036_v59, 4 }
  0x64   :  { %v326_v42 = vadd.f32 %v325_v15, %v217_v37  ;;  %v703_v0 = vrot.slane %v702_v49, 4  ;;  %v712_v3 = vrot.slane %v711_v56, 4  ;;  %v505_v8 = vrot.slane %v1047_v57, 4 }
  0x65   :  { %v223_v60 = vand.u32 2147483647, %v127_v31  ;;  %v331_v9 = vadd.f32 %v330_v18, %v221_v54  ;;  %v514_v10 = vrot.slane %v1052_v63, 4  ;;  %v631_v36 = vrot.slane %v1104_v45, 4 }
  0x66   :  { %327 = vadd.xlane.f32.xlu0 %v326_v42  ;;  %v704_v19 = vadd.f32 %v703_v0, %v702_v49  ;;  %v713_v61 = vadd.f32 %v712_v3, %v711_v56  ;;  %v640_v11 = vrot.slane %v1106_v46, 4  ;;  %v560_v27 = vadd.f32 %v559_v5, %v1033_v22 }
  0x67   :  { %v332_v20 = vadd.f32 %v331_v9, %v222_v23  ;;  %v569_v32 = vadd.f32 %v568_v24, %v1036_v59  ;;  %v506_v51 = vadd.f32 %v505_v8, %v1047_v57  ;;  %v515_v14 = vadd.f32 %v514_v10, %v1052_v63 }
  0x68   :  { %v705_v25 = vrot.slane %v704_v19, 2  ;;  %v714_v12 = vrot.slane %v713_v61, 2  ;;  %v694_v21 = vrot.slane %v693_v44, 4  ;;  %v613_v17 = vrot.slane %v1100_v39, 4 }
  0x69   :  { %v333_v4 = vadd.f32 %v332_v20, %v223_v60  ;;  %v622_v26 = vrot.slane %v1102_v35, 4  ;;  %v632_v37 = vadd.f32 %v631_v36, %v1104_v45  ;;  %v641_v13 = vadd.f32 %v640_v11, %v1106_v46 }
  0x6a   :  { %v706_v52 = vadd.f32 %v705_v25, %v704_v19  ;;  %v715_v43 = vadd.f32 %v714_v12, %v713_v61  ;;  %v685_v22 = vrot.slane %v684_v33, 4  ;;  %v561_v54 = vrot.slane %v560_v27, 2 }
  0x6b   :  { %334 = vadd.xlane.f32.xlu1 %v333_v4  ;;  %v570_v57 = vrot.slane %v569_v32, 2  ;;  %v507_v31 = vrot.slane %v506_v51, 2  ;;  %v516_v38 = vrot.slane %v515_v14, 2  ;;  %v695_v63 = vadd.f32 %v694_v21, %v693_v44 }
  0x6c   :  { %v707_v40 = vrot.slane %v706_v52, 1  ;;  %v716_v59 = vrot.slane %v715_v43, 1  ;;  %v614_v56 = vadd.f32 %v613_v17, %v1100_v39  ;;  %v623_v23 = vadd.f32 %v622_v26, %v1102_v35 }
  0x6d   :  { %v667_v45 = vrot.slane %v1120_v48, 4  ;;  %v676_v46 = vrot.slane %v1122_v28, 4  ;;  %v633_v18 = vrot.slane %v632_v37, 2  ;;  %v642_v5 = vrot.slane %v641_v13, 2 }
  0x6e   :  { %v1138_v15 = vadd.f32 %v707_v40, %v706_v52  ;;  %v1140_v49 = vadd.f32 %v716_v59, %v715_v43  ;;  %v686_v42 = vadd.f32 %v685_v22, %v684_v33  ;;  %v562_v3 = vadd.f32 %v561_v54, %v560_v27 }
  0x6f   :  { %v571_v44 = vadd.f32 %v570_v57, %v569_v32  ;;  %v508_v24 = vadd.f32 %v507_v31, %v506_v51  ;;  %v696_v8 = vrot.slane %v695_v63, 2  ;;  %v615_v60 = vrot.slane %v614_v56, 2 }
  0x70   :  { %v753_v0 = vcombine.low %v1138_v15, %v1140_v49  ;;  %v624_v9 = vrot.slane %v623_v23, 2  ;;  %v668_v39 = vadd.f32 %v667_v45, %v1120_v48  ;;  %v677_v35 = vadd.f32 %v676_v46, %v1122_v28 }
  0x71   :  { %v517_v10 = vadd.f32 %v516_v38, %v515_v14  ;;  %v634_v19 = vadd.f32 %v633_v18, %v632_v37  ;;  %v643_v61 = vadd.f32 %v642_v5, %v641_v13  ;;  %v687_v36 = vrot.slane %v686_v42, 2 }
  0x72   :  { %v563_v20 = vrot.slane %v562_v3, 1  ;;  %v572_v11 = vrot.slane %v571_v44, 1  ;;  %v509_v33 = vrot.slane %v508_v24, 1  ;;  %v697_v25 = vadd.f32 %v696_v8, %v695_v63 }
  0x73   :  { %v616_v12 = vadd.f32 %v615_v60, %v614_v56  ;;  %v625_v4 = vadd.f32 %v624_v9, %v623_v23  ;;  %v669_v27 = vrot.slane %v668_v39, 2  ;;  %v678_v32 = vrot.slane %v677_v35, 2 }
  0x74   :  { %v518_v51 = vrot.slane %v517_v10, 1  ;;  %v635_v21 = vrot.slane %v634_v19, 1  ;;  %v644_v52 = vrot.slane %v643_v61, 1  ;;  %v688_v43 = vadd.f32 %v687_v36, %v686_v42 }
  0x75   :  { %v564_v17 = vadd.f32 %v563_v20, %v562_v3  ;;  %v573_v48 = vadd.f32 %v572_v11, %v571_v44  ;;  %v510_v26 = vadd.f32 %v509_v33, %v508_v24  ;;  %v698_v28 = vrot.slane %v697_v25, 1 }
  0x76   :  { %v617_v14 = vrot.slane %v616_v12, 1  ;;  %v626_v37 = vrot.slane %v625_v4, 1  ;;  %v670_v13 = vadd.f32 %v669_v27, %v668_v39  ;;  %v679_v22 = vadd.f32 %v678_v32, %v677_v35 }
  0x77   :  { %v519_v40 = vadd.f32 %v518_v51, %v517_v10  ;;  %v636_v59 = vadd.f32 %v635_v21, %v634_v19  ;;  %v645_v54 = vadd.f32 %v644_v52, %v643_v61  ;;  %v689_v57 = vrot.slane %v688_v43, 1 }
  0x78   :  { %v766_v31 = vrot.slane %v746_v2, 7  ;;  %v775_v38 = vrot.slane %v747_v50, 7  ;;  %v778_v63 = vrot.slane %v750_v6, 6  ;;  %v699_v56 = vadd.f32 %v698_v28, %v697_v25 }
  0x79   :  { %v618_v23 = vadd.f32 %v617_v14, %v616_v12  ;;  %v627_v45 = vadd.f32 %v626_v37, %v625_v4  ;;  %v671_v46 = vrot.slane %v670_v13, 1  ;;  %v680_v18 = vrot.slane %v679_v22, 1 }
  0x7a   :  { %v690_v5 = vadd.f32 %v689_v57, %v688_v43  ;;  %v742_v42 = vcombine.low %v510_v26, %v519_v40  ;;  %v745_v53 = vcombine.low %v564_v17, %v573_v48  ;;  %v749_v55 = vcombine.low %v636_v59, %v645_v54 }
  0x7b   :  { %v672_v2 = vadd.f32 %v671_v46, %v670_v13  ;;  %v681_v3 = vadd.f32 %v680_v18, %v679_v22  ;;  %v748_v58 = vcombine.low %v618_v23, %v627_v45  ;;  %v767_v30 = vsel %vm485_vm0, %v766_v31, %v743_v7 }
  0x7c   :  { %v752_v1 = vcombine.low %v690_v5, %v699_v56  ;;  %v754_v50 = vrot.slane %v745_v53, 7  ;;  %v768_v44 = vsel %vm756_vm3, %v766_v31, %v767_v30  ;;  %v769_v24 = vrot.slane %v749_v55, 6 }
  0x7d   :  { %v751_v41 = vcombine.low %v672_v2, %v681_v3  ;;  %v758_v6 = vrot.slane %v748_v58, 6  ;;  %v776_v9 = vsel %vm485_vm0, %v775_v38, %v744_v29  ;;  %v1174_v34 = vrot.slane %v753_v0, 5 }
  0x7e   :  { %v755_v8 = vsel %vm485_vm0, %v754_v50, %v742_v42  ;;  %v1165_v60 = vrot.slane %v752_v1, 5  ;;  %v770_v39 = vsel %vm487_vm1, %v769_v24, %v768_v44  ;;  %v777_v35 = vsel %vm756_vm3, %v775_v38, %v776_v9 }
  0x7f   :  { %v757_v47 = vsel %vm756_vm3, %v754_v50, %v755_v8  ;;  %v1177_v7 = vrot.slane %v751_v41, 5  ;;  %v771_v19 = vsel %vm760_vm4, %v769_v24, %v770_v39  ;;  %v779_v62 = vsel %vm487_vm1, %v778_v63, %v777_v35 }
  0x80   :  { %v759_v10 = vsel %vm487_vm1, %v758_v6, %v757_v47  ;;  %v1187_v29 = vsel %vm1272_vm2, %v1165_v60, %v771_v19  ;;  %v780_v15 = vsel %vm760_vm4, %v778_v63, %v779_v62  ;;  %v913_v49 = vmov 0.0  }
  0x81   :  { %v761_v16 = vsel %vm760_vm4, %v758_v6, %v759_v10  ;;  %31 = vst.msk [vmem:[#allocation3] sm:$0xf] %vm1271_vm5, %v913_v49  ;;  %v1198_v61 = vsel %vm1272_vm2, %v1174_v34, %v780_v15  ;;  %v401_v32 = vlaneseq  ;;  %vm412_vm8 = vcmask 130112  }
  0x82   :  { %v1194_v0 = vsel %vm1272_vm2, %v1177_v7, %v761_v16  ;;  %vm419_vm11 = vcmask 195712   ;;  %vm426_vm15 = vcmask 261312  }
  0x83   :  { %v402_v52 = vand.u32 127, %v401_v32  ;;  %v1200_v43 = vshrl.u32 %v401_v32, 7 }
  0x85   :  { %v407_v17 = vadd.s32 4294967288, %v402_v52  ;;  %v414_v26 = vadd.s32 4294967280, %v402_v52  ;;  %v421_v28 = vadd.s32 4294967272, %v402_v52  ;;  %v1203_v37 = vsub.s32 %v402_v52, %v1200_v43 }
  0x87   :  { %v410_v22 = vsub.s32 %v407_v17, %v1200_v43  ;;  %v417_v59 = vsub.s32 %v414_v26, %v1200_v43  ;;  %v1210_v54 = vsub.s32 %v421_v28, %v1200_v43 }
  0xae   :  { %v258_v36 = vpop.xlane.xlu1 %257 }
  0xaf   :  { %vm340_vm6 = vcmp.gt.f32.partialorder %v258_v36, 1e-08 }
  0xb0   :  { %v839_v13 = vsel %vm340_vm6, 1.0, %v913_v49 }
  0xb1   :  { %v431_v57 = vrot.slane %v839_v13, %v1203_v37 }
  0xb3   :  { %v230_v20 = vpop.xlane.xlu0 %229 }
  0xb4   :  { %vm336_vm7 = vcmp.gt.f32.partialorder %v230_v20, 1e-08 }
  0xb5   :  { %v835_v40 = vsel %vm336_vm7, 1.0, %v913_v49 }
  0xb6   :  { %v406_v23 = vrot.slane %v835_v40, %v1203_v37 }
  0xb7   :  { %v265_v11 = vpop.xlane.xlu1 %264 }
  0xb8   :  { %v237_v33 = vpop.xlane.xlu0 %236  ;;  %vm341_vm9 = vcmp.gt.f32.partialorder %v265_v11, 1e-08 }
  0xb9   :  { %vm337_vm10 = vcmp.gt.f32.partialorder %v237_v33, 1e-08  ;;  %v840_v38 = vsel %vm341_vm9, 1.0, %v913_v49 }
  0xba   :  { %v836_v63 = vsel %vm337_vm10, 1.0, %v913_v49  ;;  %v435_v5 = vrot.slane %v840_v38, %v410_v22  ;;  %v915_v38 = vmov 839922192  }
  0xbb   :  { %v411_v55 = vrot.slane %v836_v63, %v410_v22  ;;  %v806_v63 = vunpack.c.l.s4 %v915_v38 }
  0xbc   :  { %v272_v25 = vpop.xlane.xlu1 %271  ;;  %v436_v10 = vsel %vm412_vm8, %v435_v5, %v431_v57 }
  0xbd   :  { %vm342_vm12 = vcmp.gt.f32.partialorder %v272_v25, 1e-08  ;;  %v413_v16 = vsel %vm412_vm8, %v411_v55, %v406_v23 }
  0xbe   :  { %v841_v45 = vsel %vm342_vm12, 1.0, %v913_v49  ;;  %vm1273_vm12 = vcmask 1043459  }
  0xbf   :  { %v440_v1 = vrot.slane %v841_v45, %v417_v59 }
  0xc0   :  { %v244_v12 = vpop.xlane.xlu0 %243 }
  0xc1   :  { %vm338_vm13 = vcmp.gt.f32.partialorder %v244_v12, 1e-08  ;;  %v441_v15 = vsel %vm419_vm11, %v440_v1, %v436_v10 }
  0xc2   :  { %v837_v46 = vsel %vm338_vm13, 1.0, %v913_v49 }
  0xc3   :  { %v418_v50 = vrot.slane %v837_v46, %v417_v59 }
  0xc5   :  { %v293_v4 = vpop.xlane.xlu1 %292  ;;  %v420_v20 = vsel %vm419_vm11, %v418_v50, %v413_v16 }
  0xc6   :  { %vm345_vm14 = vcmp.gt.f32.partialorder %v293_v4, 1e-08 }
  0xc7   :  { %v286_v27 = vpop.xlane.xlu0 %285  ;;  %v844_v18 = vsel %vm345_vm14, 1.0, %v913_v49 }
  0xc8   :  { %vm344_vm3 = vcmp.gt.f32.partialorder %v286_v27, 1e-08  ;;  %v454_v30 = vrot.slane %v844_v18, %v410_v22 }
  0xc9   :  { %v843_v42 = vsel %vm344_vm3, 1.0, %v913_v49 }
  0xca   :  { %v450_v44 = vrot.slane %v843_v42, %v1203_v37 }
  0xcb   :  { %v279_v51 = vpop.xlane.xlu1 %278 }
  0xcc   :  { %vm343_vm4 = vcmp.gt.f32.partialorder %v279_v51, 1e-08  ;;  %v455_v11 = vsel %vm412_vm8, %v454_v30, %v450_v44 }
  0xcd   :  { %v842_v53 = vsel %vm343_vm4, 1.0, %v913_v49 }
  0xce   :  { %v445_v24 = vrot.slane %v842_v53, %v1210_v54 }
  0xd0   :  { %v446_v33 = vsel %vm426_vm15, %v445_v24, %v441_v15 }
  0xd3   :  { %v251_v21 = vpop.xlane.xlu0 %250 }
  0xd4   :  { %vm339_vm6 = vcmp.gt.f32.partialorder %v251_v21, 1e-08 }
  0xd5   :  { %v838_v2 = vsel %vm339_vm6, 1.0, %v913_v49 }
  0xd6   :  { %v425_v9 = vrot.slane %v838_v2, %v1210_v54 }
  0xd8   :  { %v427_v12 = vsel %vm426_vm15, %v425_v9, %v420_v20 }
  0xd9   :  { %v486_v17 = vsel %vm485_vm0, %v446_v33, %v427_v12  ;;  %vm764_vm0 = vcmask 1047559  }
  0xda   :  { %v774_v57 = vsel %vm764_vm0, %v1165_v60, %v1187_v29 }
  0xdf   :  { %v314_v48 = vpop.xlane.xlu1 %313 }
  0xe0   :  { %vm348_vm9 = vcmp.gt.f32.partialorder %v314_v48, 1e-08 }
  0xe1   :  { %v847_v8 = vsel %vm348_vm9, 1.0, %v913_v49 }
  0xe2   :  { %v469_v36 = vrot.slane %v847_v8, %v1203_v37  ;;  %v914_v37 = vmov 0  }
  0xe3   :  { %v300_v14 = vpop.xlane.xlu0 %299  ;;  %858 = vset.pattern.permute.xlu1 %v914_v37  ;;  %859 = vset.pattern.permute.xlu0 %v914_v37 }
  0xe4   :  { %vm346_vm7 = vcmp.gt.f32.partialorder %v300_v14, 1e-08 }
  0xe5   :  { %v845_v3 = vsel %vm346_vm7, 1.0, %v913_v49 }
  0xe6   :  { %v459_v47 = vrot.slane %v845_v3, %v417_v59 }
  0xe8   :  { %v307_v31 = vpop.xlane.xlu1 %306  ;;  %v460_v4 = vsel %vm419_vm11, %v459_v47, %v455_v11 }
  0xe9   :  { %vm347_vm2 = vcmp.gt.f32.partialorder %v307_v31, 1e-08  ;;  %v783_v31 = vsel %vm764_vm0, %v1174_v34, %v1198_v61 }
  0xea   :  { %v846_v41 = vsel %vm347_vm2, 1.0, %v913_v49 }
  0xeb   :  { %v464_v19 = vrot.slane %v846_v41, %v1210_v54 }
  0xed   :  { %v321_v56 = vpop.xlane.xlu0 %320  ;;  %v465_v51 = vsel %vm426_vm15, %v464_v19, %v460_v4 }
  0xee   :  { %vm349_vm5 = vcmp.gt.f32.partialorder %v321_v56, 1e-08  ;;  %v488_v26 = vsel %vm487_vm1, %v465_v51, %v486_v17  ;;  %v807_v56 = vunpack.c.0.s8 %v806_v63 }
  0xef   :  { %v848_v58 = vsel %vm349_vm5, 1.0, %v913_v49  ;;  %vm492_vm5 = vcmask 257024  }
  0xf0   :  { %v473_v39 = vrot.slane %v848_v58, %v410_v22  ;;  %v810_v23 = vsub.s32 %v807_v56, %v1200_v43 }
  0xf2   :  { %v474_v27 = vsel %vm412_vm8, %v473_v39, %v469_v36  ;;  %vm1274_vm8 = vcmask 3072  }
  0xf3   :  { %v328_v6 = vpop.xlane.xlu0 %327 }
  0xf4   :  { %vm350_vm10 = vcmp.gt.f32.partialorder %v328_v6, 1e-08 }
  0xf5   :  { %v849_v35 = vsel %vm350_vm10, 1.0, %v913_v49 }
  0xf6   :  { %v478_v62 = vrot.slane %v849_v35, %v417_v59 }
  0xf8   :  { %v335_v25 = vpop.xlane.xlu1 %334  ;;  %v479_v21 = vsel %vm419_vm11, %v478_v62, %v474_v27 }
  0xf9   :  { %vm351_vm2 = vcmp.gt.f32.partialorder %v335_v25, 1e-08 }
  0xfa   :  { %v850_v32 = vsel %vm351_vm2, 1.0, %v913_v49  ;;  %v384_v49 = vld [vmem:[#allocation3] sm:$0xf] }
  0xfb   :  { %v483_v52 = vrot.slane %v850_v32, %v1210_v54  ;;  %v765_v54 = vsel %vm764_vm0, %v1177_v7, %v1194_v0 }
  0xfd   :  { %v484_v48 = vsel %vm426_vm15, %v483_v52, %v479_v21 }
  0xfe   :  { %v490_v28 = vsel %vm1273_vm12, %v484_v48, %v488_v26 }
  0xff   :  { %v493_v14 = vsel %vm492_vm5, %v490_v28, 0.0 }
 0x100   :  { %494 = vadd.xlane.f32.xlu0 %v493_v14 }
 0x18d   :  { %v495_v13 = vpop.xlane.xlu0 %494 }
 0x18e   :  { %v496_v22 = vadd.f32 %v495_v13, %v384_v49 }
 0x190   :  { %498 = vst.msk [vmem:[#allocation3] sm:$0xf] %vm1274_vm8, %v496_v22 }
 0x197   :  { %v796_v40 = vld [vmem:[#allocation3] sm:$0xf] }
 0x198   :  { %v797_v59 = vmax.f32 %v796_v40, 1.0 }
 0x19a   :  { %803 = vperm.xlu1 %858, %v797_v59  }
 0x219   :  { %v804_v45 = vpop.permute.xlu1 %803 }
 0x21a   :  { %v811_v46 = vrot.slane %v804_v45, %v810_v23 }
 0x21c   :  { %860 = vrcp.f32 %v811_v46 }
 0x226   :  { %v861_v18 = vpop.eup %860 }
 0x227   :  { %v814_v5 = vmul.f32 %v861_v18, %v765_v54  ;;  %v815_v42 = vmul.f32 %v861_v18, %v774_v57  ;;  %v816_v7 = vmul.f32 %v861_v18, %v783_v31 }
 0x229   :  { %817 = vst [vmem:[#allocation7] sm:$0xff] %v814_v5  ;;  %818 = vst [vmem:[#allocation7 + $0x8] sm:$0xff] %v815_v42 }
 0x22a   :  { %819 = vst [vmem:[#allocation7 + $0x10] sm:$0xff] %v816_v7 }
 0x22b   :  { %895 = shalt.err (!%p892_p12)
}
 0x22c   :  { %s896_s24 = scalar_lea.hbm %s1270_s1, 384 }
 0x22d   :  { %p897_p13 = scmp.ne.s32.totalorder %s1270_s1, %s896_s24  ;;  %p900_p0 = scmp.lt.u32.totalorder %s896_s24, %s1270_s1 }
 0x22f   :  { %p902_p1 = pnand %p900_p0, %p897_p13 }
 0x231   :  { %905 = shalt.err (!%p902_p1)
}
 0x232   :  { %829 = dma.vmem_to_hbm [thread:$0]  %s827_s20, 384, %s1270_s1, [#allocation6]  }
 0x233   :  { %908 = dma.done.wait [#allocation6], 384  }
 0x234   :  { %909 = vsyncadd [#allocation6], 4294966912 }
 0x235   :  { %833 = vsyncpa [#allocation5], 1 }
 0x236   :  { %834 = vsyncpa [#allocation6], 1 }

</bundles_post_ra>
